<compile_context>
chip_gen: v6e
topology: v6e:2x2x1
jax: 0.10.0
libtpu: 0.0.40
codegen_flags: <defaults>
</compile_context>

<pallas_src>
import jax
import jax.numpy as jnp
from jax.experimental import pallas as pl
from jax.experimental.pallas import tpu as pltpu


def _graph_res_conv_kernel(x_ref, adj_ref, w1_ref, b1_ref, w2_ref, b2_ref, o_ref):
    # Per-step tile: x (Bt, N, D) f32, adj (Bt, N, N) f32,
    # fused weights (2D, D) in compute dtype, fused biases (1, D) f32.
    bt, n, d = x_ref.shape
    cdt = w1_ref.dtype                       # compute dtype for MXU inputs

    x = x_ref[...]                           # (Bt, N, D) f32
    adj = adj_ref[...].astype(cdt)           # (Bt, N, N)
    w1 = w1_ref[...]                         # (2D, D)
    w2 = w2_ref[...]                         # (2D, D)
    b1 = b1_ref[...]                         # (1, D) f32  (= b_a + b_b)
    b2 = b2_ref[...]                         # (1, D) f32

    def gcn(h, w, b):
        # h: (Bt, N, D) f32;  w: (2D, D);  b: (1, D) f32
        hc = h.astype(cdt)
        # adjacency aggregation (batched matmul, f32 accumulation)
        ah = jnp.einsum('bnm,bmd->bnd', adj, hc,
                        preferred_element_type=jnp.float32)
        # fused Linear pair: [h, adj@h] @ [W_a^T ; W_b^T]  (single MXU dot,
        # M = Bt*N rows, K = 2D contraction depth)
        cat = jnp.concatenate([hc, ah.astype(cdt)], axis=-1)      # (Bt, N, 2D)
        out2d = jnp.dot(cat.reshape(bt * n, 2 * d), w,
                        preferred_element_type=jnp.float32) + b   # (Bt*N, D) f32
        return out2d.reshape(bt, n, d)

    h1 = jnp.maximum(gcn(x, w1, b1), 0.0)    # gcn_1 + relu1   (f32)
    h2 = gcn(h1, w2, b2)                     # gcn_2           (f32)
    o_ref[...] = jnp.maximum(h2 + x, 0.0).astype(o_ref.dtype)    # residual + relu2


def _choose_block_batch(B, N, D, *, target_rows=256, vmem_budget_bytes=24 << 20):
    """Pick graphs-per-grid-step: fill MXU rows (Bt*N ~ target_rows), stay
    inside a v7x-conservative VMEM budget, and keep grid length >= 2 so both
    v7x TensorCores get work on the 'parallel' batch axis."""
    def fits(bt):
        # double-buffered x, adj, out tiles (f32); weights/biases are tiny.
        per_graph_bytes = (N * D + N * N + N * D) * 4
        return 2 * bt * per_graph_bytes <= vmem_budget_bytes

    divisors = [dd for dd in range(1, B + 1) if B % dd == 0]
    cands = [dd for dd in divisors if dd * N <= target_rows and fits(dd)] or [1]
    bt = max(cands)
    if B // bt < 2:
        smaller = [dd for dd in cands if B // dd >= 2]
        if smaller:
            bt = max(smaller)
    return bt


def graph_res_convolution(x, adj, params, *, block_batch=None,
                          compute_dtype=jnp.float32):
    """x: (B, N, D) f32, adj: (B, N, N) f32, params: dict of (D, D)/(1, D)."""
    B, N, D = x.shape

    # Fuse each layer's Linear pair once in the wrapper (free in XLA):
    #   [W_a^T ; W_b^T] -> (2D, D),  b_a + b_b -> (1, D)
    w1 = jnp.concatenate([params["gcn1_fc1_w"].T, params["gcn1_fc2_w"].T],
                         axis=0).astype(compute_dtype)
    w2 = jnp.concatenate([params["gcn2_fc1_w"].T, params["gcn2_fc2_w"].T],
                         axis=0).astype(compute_dtype)
    b1 = (params["gcn1_fc1_b"] + params["gcn1_fc2_b"]).astype(jnp.float32)
    b2 = (params["gcn2_fc1_b"] + params["gcn2_fc2_b"]).astype(jnp.float32)

    bt = block_batch if block_batch is not None else _choose_block_batch(B, N, D)
    assert B % bt == 0, "block_batch must divide the batch size"

    # Constant index maps keep the fused weights/biases VMEM-resident across
    # the grid (no re-DMA).  D < 128 lane padding is inherent to state_dim=32;
    # the Bt-batched output block amortizes the masked stores.
    w_spec = pl.BlockSpec((2 * D, D), lambda b: (0, 0))
    b_spec = pl.BlockSpec((1, D), lambda b: (0, 0))

    return pl.pallas_call(
        _graph_res_conv_kernel,
        out_shape=jax.ShapeDtypeStruct((B, N, D), x.dtype),
        grid_spec=pltpu.PrefetchScalarGridSpec(
            num_scalar_prefetch=0,
            grid=(B // bt,),
            in_specs=[
                pl.BlockSpec((bt, N, D), lambda b: (b, 0, 0)),   # x
                pl.BlockSpec((bt, N, N), lambda b: (b, 0, 0)),   # adj
                w_spec, b_spec,                                  # fused gcn_1
                w_spec, b_spec,                                  # fused gcn_2
            ],
            out_specs=pl.BlockSpec((bt, N, D), lambda b: (b, 0, 0)),
        ),
        compiler_params=pltpu.CompilerParams(
            dimension_semantics=("parallel",)),
    )(x, adj, w1, b1, w2, b2)


def _reference(x, adj, p, compute_dtype=jnp.float32):
    """Pure-JAX reference mirroring the PyTorch forward (same cast points as
    the kernel when compute_dtype != f32; accumulation stays f32)."""
    cdt = compute_dtype

    def gcn(h, adj, w1, b1, w2, b2):
        hc = h.astype(cdt)
        state_in = jnp.dot(hc, w1.T.astype(cdt),
                           preferred_element_type=jnp.float32) + b1[0]
        ah = jnp.einsum('bnm,bmd->bnd', adj.astype(cdt), hc,
                        preferred_element_type=jnp.float32)
        fwd = jnp.dot(ah.astype(cdt), w2.T.astype(cdt),
                      preferred_element_type=jnp.float32) + b2[0]
        return state_in + fwd

    o1 = gcn(x, adj, p["gcn1_fc1_w"], p["gcn1_fc1_b"],
             p["gcn1_fc2_w"], p["gcn1_fc2_b"])
    o1 = jnp.maximum(o1, 0.0)
    o2 = gcn(o1, adj, p["gcn2_fc1_w"], p["gcn2_fc1_b"],
             p["gcn2_fc2_w"], p["gcn2_fc2_b"])
    return jnp.maximum(o2 + x, 0.0)


if __name__ == "__main__":
    B, N, D = 2, 8, 32   # batch, graph nodes, state_dim

    key = jax.random.PRNGKey(0)
    ks = jax.random.split(key, 10)

    x = jax.random.normal(ks[0], (B, N, D), dtype=jnp.float32)
    adj = jax.nn.softmax(
        jax.random.normal(ks[1], (B, N, N), dtype=jnp.float32), axis=-1)

    # Deterministic "Linear"-style init: U(-1/sqrt(D), 1/sqrt(D)).
    bound = 1.0 / (D ** 0.5)
    def init_w(k):
        return jax.random.uniform(k, (D, D), jnp.float32, -bound, bound)
    def init_b(k):
        return jax.random.uniform(k, (1, D), jnp.float32, -bound, bound)

    params = {
        "gcn1_fc1_w": init_w(ks[2]), "gcn1_fc1_b": init_b(ks[3]),
        "gcn1_fc2_w": init_w(ks[4]), "gcn1_fc2_b": init_b(ks[5]),
        "gcn2_fc1_w": init_w(ks[6]), "gcn2_fc1_b": init_b(ks[7]),
        "gcn2_fc2_w": init_w(ks[8]), "gcn2_fc2_b": init_b(ks[9]),
    }

    # 1) f32 path (exact PyTorch semantics), auto block-batch (grid kept >= 2).
    out = graph_res_convolution(x, adj, params)
    out = jax.block_until_ready(out)
    ref = _reference(x, adj, params)
    assert out.shape == (B, N, D)
    assert jnp.allclose(out, ref, atol=1e-5, rtol=1e-5), "f32 mismatch vs reference"

    # 2) bf16-MXU path with all graphs in one batched tile (exercises the
    #    fused-weight, Bt-batched code path); accumulation/bias/residual/relu
    #    stay f32, compared against a reference using the same cast points.
    out_bf16 = graph_res_convolution(x, adj, params, block_batch=B,
                                     compute_dtype=jnp.bfloat16)
    out_bf16 = jax.block_until_ready(out_bf16)
    ref_bf16 = _reference(x, adj, params, compute_dtype=jnp.bfloat16)
    assert jnp.allclose(out_bf16, ref_bf16, atol=1e-3, rtol=1e-3), \
        "bf16 mismatch vs bf16 reference"

    print("KERNEL_OK")
</pallas_src>

<mosaic_0001>
module attributes {stable_mosaic.version = 11 : i64} {
  func.func @_graph_res_conv_kernel(%arg0: i32, %arg1: memref<1x8x32xf32, #tpu.memory_space<vmem>>, %arg2: memref<1x8x8xf32, #tpu.memory_space<vmem>>, %arg3: memref<64x32xf32, #tpu.memory_space<vmem>>, %arg4: memref<1x32xf32, #tpu.memory_space<vmem>>, %arg5: memref<64x32xf32, #tpu.memory_space<vmem>>, %arg6: memref<1x32xf32, #tpu.memory_space<vmem>>, %arg7: memref<1x8x32xf32, #tpu.memory_space<vmem>>) attributes {dimension_semantics = [#tpu.dimension_semantics<parallel>], iteration_bounds = array<i64: 2>, scalar_prefetch = 0 : i64, scratch_operands = 0 : i64, tpu.core_type = #tpu.core_type<tc>, window_params = [{transform_indices = @transform_0, window_bounds = array<i64: 1, 8, 32>}, {transform_indices = @transform_1, window_bounds = array<i64: 1, 8, 8>}, {pipeline_mode = #tpu.pipeline_mode<synchronous>, transform_indices = @transform_2, window_bounds = array<i64: 64, 32>}, {pipeline_mode = #tpu.pipeline_mode<synchronous>, transform_indices = @transform_3, window_bounds = array<i64: 1, 32>}, {pipeline_mode = #tpu.pipeline_mode<synchronous>, transform_indices = @transform_4, window_bounds = array<i64: 64, 32>}, {pipeline_mode = #tpu.pipeline_mode<synchronous>, transform_indices = @transform_5, window_bounds = array<i64: 1, 32>}, {transform_indices = @transform_6, window_bounds = array<i64: 1, 8, 32>}]} {
    %c0 = arith.constant 0 : index
    %c0_0 = arith.constant 0 : index
    %c0_1 = arith.constant 0 : index
    %0 = vector.load %arg1[%c0, %c0_0, %c0_1] : memref<1x8x32xf32, #tpu.memory_space<vmem>>, vector<1x8x32xf32>
    %c0_2 = arith.constant 0 : index
    %c0_3 = arith.constant 0 : index
    %c0_4 = arith.constant 0 : index
    %1 = vector.load %arg2[%c0_2, %c0_3, %c0_4] : memref<1x8x8xf32, #tpu.memory_space<vmem>>, vector<1x8x8xf32>
    %c0_5 = arith.constant 0 : index
    %c0_6 = arith.constant 0 : index
    %2 = vector.load %arg3[%c0_5, %c0_6] : memref<64x32xf32, #tpu.memory_space<vmem>>, vector<64x32xf32>
    %c0_7 = arith.constant 0 : index
    %c0_8 = arith.constant 0 : index
    %3 = vector.load %arg5[%c0_7, %c0_8] : memref<64x32xf32, #tpu.memory_space<vmem>>, vector<64x32xf32>
    %c0_9 = arith.constant 0 : index
    %c0_10 = arith.constant 0 : index
    %4 = vector.load %arg4[%c0_9, %c0_10] : memref<1x32xf32, #tpu.memory_space<vmem>>, vector<1x32xf32>
    %c0_11 = arith.constant 0 : index
    %c0_12 = arith.constant 0 : index
    %5 = vector.load %arg6[%c0_11, %c0_12] : memref<1x32xf32, #tpu.memory_space<vmem>>, vector<1x32xf32>
    "tpu.trace_start"() <{level = 10 : i32, message = "bnm,bmd->bnd"}> : () -> ()
    %cst = arith.constant dense<0.000000e+00> : vector<1x8x32xf32>
    %6 = tpu.matmul %1, %0, %cst {dimension_numbers = #tpu.dot_dimension_numbers<[2], [1], [1], [2], [0, 0, 0, 1, 1, 2], [0], [0]>} : vector<1x8x8xf32>, vector<1x8x32xf32>, vector<1x8x32xf32> -> vector<1x8x32xf32>
    "tpu.trace_stop"() : () -> ()
    %7 = tpu.concatenate %0, %6 in 2 : vector<1x8x32xf32>, vector<1x8x32xf32> -> vector<1x8x64xf32>
    %8 = vector.shape_cast %7 : vector<1x8x64xf32> to vector<8x64xf32>
    %cst_13 = arith.constant dense<0.000000e+00> : vector<8x32xf32>
    %9 = tpu.matmul %8, %2, %cst_13 {dimension_numbers = #tpu.dot_dimension_numbers<[1], [0], [0], [1], [0, 0, 1, 1], [], []>} : vector<8x64xf32>, vector<64x32xf32>, vector<8x32xf32> -> vector<8x32xf32>
    %10 = vector.broadcast %4 : vector<1x32xf32> to vector<8x32xf32>
    %11 = arith.addf %9, %10 : vector<8x32xf32>
    %12 = vector.shape_cast %11 : vector<8x32xf32> to vector<1x8x32xf32>
    %cst_14 = arith.constant 0.000000e+00 : f32
    %13 = vector.broadcast %cst_14 : f32 to vector<1x8x32xf32>
    %14 = arith.maximumf %12, %13 : vector<1x8x32xf32>
    "tpu.trace_start"() <{level = 10 : i32, message = "bnm,bmd->bnd"}> : () -> ()
    %cst_15 = arith.constant dense<0.000000e+00> : vector<1x8x32xf32>
    %15 = tpu.matmul %1, %14, %cst_15 {dimension_numbers = #tpu.dot_dimension_numbers<[2], [1], [1], [2], [0, 0, 0, 1, 1, 2], [0], [0]>} : vector<1x8x8xf32>, vector<1x8x32xf32>, vector<1x8x32xf32> -> vector<1x8x32xf32>
    "tpu.trace_stop"() : () -> ()
    %16 = tpu.concatenate %14, %15 in 2 : vector<1x8x32xf32>, vector<1x8x32xf32> -> vector<1x8x64xf32>
    %17 = vector.shape_cast %16 : vector<1x8x64xf32> to vector<8x64xf32>
    %cst_16 = arith.constant dense<0.000000e+00> : vector<8x32xf32>
    %18 = tpu.matmul %17, %3, %cst_16 {dimension_numbers = #tpu.dot_dimension_numbers<[1], [0], [0], [1], [0, 0, 1, 1], [], []>} : vector<8x64xf32>, vector<64x32xf32>, vector<8x32xf32> -> vector<8x32xf32>
    %19 = vector.broadcast %5 : vector<1x32xf32> to vector<8x32xf32>
    %20 = arith.addf %18, %19 : vector<8x32xf32>
    %21 = vector.shape_cast %20 : vector<8x32xf32> to vector<1x8x32xf32>
    %22 = arith.addf %21, %0 : vector<1x8x32xf32>
    %cst_17 = arith.constant 0.000000e+00 : f32
    %23 = vector.broadcast %cst_17 : f32 to vector<1x8x32xf32>
    %24 = arith.maximumf %22, %23 : vector<1x8x32xf32>
    %c0_18 = arith.constant 0 : index
    %c0_19 = arith.constant 0 : index
    %c0_20 = arith.constant 0 : index
    %25 = vector.load %arg7[%c0_18, %c0_19, %c0_20] : memref<1x8x32xf32, #tpu.memory_space<vmem>>, vector<1x8x32xf32>
    tpu.vector_store %arg7[%c0_18, %c0_19, %c0_20], %24 {strides = array<i32>} : memref<1x8x32xf32, #tpu.memory_space<vmem>>, vector<1x8x32xf32>,
    return
  }
  func.func @transform_0(%arg0: i32) -> (i32, i32, i32) {
    %c0_i32 = arith.constant 0 : i32
    %c0_i32_0 = arith.constant 0 : i32
    %c0_i32_1 = arith.constant 0 : i32
    return %arg0, %c0_i32, %c0_i32_0 : i32, i32, i32
  }
  func.func @transform_1(%arg0: i32) -> (i32, i32, i32) {
    %c0_i32 = arith.constant 0 : i32
    %c0_i32_0 = arith.constant 0 : i32
    %c0_i32_1 = arith.constant 0 : i32
    return %arg0, %c0_i32, %c0_i32_0 : i32, i32, i32
  }
  func.func @transform_2(%arg0: i32) -> (i32, i32) {
    %c0_i32 = arith.constant 0 : i32
    %c0_i32_0 = arith.constant 0 : i32
    %c0_i32_1 = arith.constant 0 : i32
    return %c0_i32, %c0_i32_0 : i32, i32
  }
  func.func @transform_3(%arg0: i32) -> (i32, i32) {
    %c0_i32 = arith.constant 0 : i32
    %c0_i32_0 = arith.constant 0 : i32
    %c0_i32_1 = arith.constant 0 : i32
    return %c0_i32, %c0_i32_0 : i32, i32
  }
  func.func @transform_4(%arg0: i32) -> (i32, i32) {
    %c0_i32 = arith.constant 0 : i32
    %c0_i32_0 = arith.constant 0 : i32
    %c0_i32_1 = arith.constant 0 : i32
    return %c0_i32, %c0_i32_0 : i32, i32
  }
  func.func @transform_5(%arg0: i32) -> (i32, i32) {
    %c0_i32 = arith.constant 0 : i32
    %c0_i32_0 = arith.constant 0 : i32
    %c0_i32_1 = arith.constant 0 : i32
    return %c0_i32, %c0_i32_0 : i32, i32
  }
  func.func @transform_6(%arg0: i32) -> (i32, i32, i32) {
    %c0_i32 = arith.constant 0 : i32
    %c0_i32_0 = arith.constant 0 : i32
    %c0_i32_1 = arith.constant 0 : i32
    return %arg0, %c0_i32, %c0_i32_0 : i32, i32, i32
  }
}

</mosaic_0001>

<bundles_post_ra>
// kernel: tpu_custom_call.1
= control target key start
LH: loop header
LB: loop body
LE: loop exit
PB: predicated region body
PF: predicated region fallthrough
CT: control target
= control target key end

     0   :  { %11 = vsyncpa [#allocation3], 0  ;;  %s1101_s0 = inlined_call_operand.vmem [shape: f32[2,8,32], index: 0, kind: input, shape index: {}]   ;;  %s1102_s1 = inlined_call_operand.vmem [shape: f32[2,8,8], index: 1, kind: input, shape index: {}]   ;;  %s1103_s2 = inlined_call_operand.vmem [shape: f32[64,32], index: 2, kind: input, shape index: {}]   ;;  %s1104_s3 = inlined_call_operand.vmem [shape: f32[1,32], index: 3, kind: input, shape index: {}]   ;;  %s1105_s4 = inlined_call_operand.vmem [shape: f32[64,32], index: 4, kind: input, shape index: {}]   ;;  %s1106_s5 = inlined_call_operand.vmem [shape: f32[1,32], index: 5, kind: input, shape index: {}]   ;;  %s1107_s6 = inlined_call_operand.hbm [shape: f32[2,8,32], index: 6, kind: output, shape index: {}]  }
   0x1   :  { %13 = vsyncpa [#allocation3 + $0x1], 0  ;;  %s917_s21 = smov 0   ;;  %s919_s22 = smov 0  }
   0x2   :  { %s921_s23 = smov 0   ;;  %s923_s24 = smov 0  }
   0x3 LB: > { %s938_s25 = sadd.s32 4294967295, %s876_s24   ;;  %s687_s26 = sadd.s32 4294967294, %s876_s24   ;;  %s876_s24 = sphi %s923_s24, %s1113_s24   ;;  %s872_s23 = sphi %s921_s23, %s1112_s23   ;;  %s868_s22 = sphi %s919_s22, %s1111_s22   ;;  %s864_s21 = sphi %s917_s21, %s1110_s21  }
   0x4   : > { %s942_s27 = sadd.s32 1, %s876_s24   ;;  %s162_s28 = sadd.s32 1, %s872_s23 }
   0x5   : > { %s159_s29 = ssub.s32 %s876_s24, %s942_s27  ;;  %p172_p0 = scmp.ne.s32.totalorder %s872_s23, %s868_s22 }
   0x6   : > { %p160_p1 = scmp.eq.s32.totalorder %s159_s29, 0  ;;  %p173_p2 = scmp.eq.s32.totalorder %s938_s25, 1 }
   0x7   : > { %p178_p3 = scmp.ne.s32.totalorder %s868_s22, %s864_s21  ;;  %p179_p4 = scmp.eq.s32.totalorder %s687_s26, 1 }
   0x8   : > { %s953_s30 = scalar_select %p160_p1, %s872_s23, %s162_s28  }
   0x9   : > { %p955_p5 = por %p173_p2, %p172_p0  ;;  %p959_p6 = por %p179_p4, %p178_p3 }
   0xa   : > { %p690_p7 = scmp.ge.s32.totalorder %s876_s24, 1  ;;  %p223_p8 = scmp.lt.s32.totalorder %s876_s24, 3 }
   0xc   : > { %p224_p9 = pnand %p690_p7, %p223_p8 }
   0xd   : > { %p256_p10 = scmp.lt.s32.totalorder (!%p224_p9), %s938_s25, 1  ;;  %s880_s18 = smov (!%p224_p9), 32  }
   0xe   : > { %227 = sbr.rel (%p224_p9) target bundleno = 1053 (0x41d), region = 44  ;;  %s253_s29 = sand.u32 (!%p224_p9), 1, %s868_s22  }
   0xf   : > { %s701_s12 = sshll.u32 (!%p224_p9), %s938_s25, 7  ;;  %s603_s17 = scalar_lea.sflag (!%p224_p9), [#allocation3], %s253_s29 }
  0x10   : > { %s881_s20 = smov (!%p224_p9), [#allocation2]  }
  0x13   : > { %v878_v0 = vmov 0.0   ;;  %vm879_vm0 = vmmov 0   ;;  %s257_s9 = scalar_select %p256_p10, %s938_s25, 1  ;;  %vm284_vm1 = vcmask 64512   ;;  %v273_v3 = vld [vmem:[%s1103_s2 + $0x38] sm:$0xff]  ;;  %v272_v4 = vld [vmem:[%s1103_s2 + $0x30] sm:$0xff] }
  0x14   : > { %726 = vmatprep.subr.mxu1 %v878_v0  ;;  %728 = vmatprep.mubr.msk.f32.mxu1 %vm879_vm0, %v878_v0  ;;  %v271_v5 = vld [vmem:[%s1103_s2 + $0x28] sm:$0xff]  ;;  %v270_v6 = vld [vmem:[%s1103_s2 + $0x20] sm:$0xff]  ;;  %v269_v7 = vld [vmem:[%s1103_s2 + $0x18] sm:$0xff]  ;;  %vm362_vm2 = vcmask 261120   ;;  %vm370_vm3 = vcmask 523264   ;;  %s820_s25 = sshll.u32 %s881_s20, 4  ;;  %s821_s25 = int_to_ptr.vmem [resolvable:$false] %s820_s25 }
  0x15   : > { %750 = vmatprep.subr.mxu0 %v878_v0  ;;  %752 = vmatprep.mubr.msk.f32.mxu0 %vm879_vm0, %v878_v0  ;;  %s692_s10 = sshll.u32 %s257_s9, 3  ;;  %v268_v8 = vld [vmem:[%s1103_s2 + $0x10] sm:$0xff]  ;;  %v267_v9 = vld [vmem:[%s1103_s2 + $0x8] sm:$0xff]  ;;  %v266_v10 = vld [vmem:[%s1103_s2] sm:$0xff]  ;;  %s691_s9 = sshll.u32 %s253_s29, 3 }
  0x16   : > { %s259_s13 = scalar_lea.vmem %s1101_s0, %s692_s10  ;;  %s263_s16 = scalar_lea.vmem %s1102_s1, %s692_s10  ;;  %v695_v15 = vld [vmem:[%s1104_s3] ss:$0 sm:$0xff]  ;;  %v281_v20 = vld [vmem:[%s1105_s4 + $0x38] sm:$0xff]  ;;  %v280_v21 = vld [vmem:[%s1105_s4 + $0x30] sm:$0xff] }
  0x17   : > { %v979_v1 = vld [vmem:[%s259_s13] sm:$0xff]  ;;  %v279_v22 = vld [vmem:[%s1105_s4 + $0x28] sm:$0xff]  ;;  %v277_v24 = vld [vmem:[%s1105_s4 + $0x18] sm:$0xff]  ;;  %s255_s13 = scalar_lea.vmem [#allocation2], %s691_s9  ;;  %s822_s26 = scalar_lea.vmem %s821_s25, 256 }
  0x18   : > { %v265_v2 = vld [vmem:[%s263_s16] sm:$0xff]  ;;  %727 = vmatpush3.msra.mxu1 %v979_v1  ;;  %v276_v25 = vld [vmem:[%s1105_s4 + $0x10] sm:$0xff]  ;;  %v275_v26 = vld [vmem:[%s1105_s4 + $0x8] sm:$0xff]  ;;  %s616_s14 = sshll.u32 %s255_s13, 4  ;;  %s614_s16 = scalar_lea.hbm %s1107_s6, %s701_s12  ;;  %s617_s14 = int_to_ptr.vmem [resolvable:$true] %s616_s14 }
  0x19   : > { %729 = vmatmul.mubr.msk.f32.vlgmr.msra.gmra.mxu1 %vm284_vm1, %v265_v2  ;;  %731 = vmatprep.subr.mxu1 %v878_v0  ;;  %v278_v23 = vld [vmem:[%s1105_s4 + $0x20] sm:$0xff]  ;;  %s816_s19 = scalar_lea.vmem %s617_s14, 128  ;;  %p823_p0 = scmp.lt.s32.totalorder %s617_s14, %s821_s25 }
  0x1a   : > { %747 = vmatprep.mubr.msk.f32.mxu1 %vm879_vm0, %v878_v0  ;;  %732 = vmatpush3.msra.mxu1 %v273_v3  ;;  %v274_v27 = vld [vmem:[%s1105_s4] sm:$0xff]  ;;  %p817_p11 = scmp.ne.s32.totalorder %s617_s14, %s816_s19  ;;  %p824_p1 = scmp.lt.s32.totalorder %s822_s26, %s816_s19 }
  0x1b   : > { %733 = vmatprep.subr.mxu1 %v878_v0  ;;  %v698_v32 = vld [vmem:[%s1106_s5] ss:$0 sm:$0xff] }
  0x1c   : > { %734 = vmatpush3.msra.mxu1 %v272_v4  ;;  %p818_p12 = pnand %p817_p11, %p955_p5  ;;  %p825_p2 = por %p824_p1, %p823_p0 }
  0x1d   : > { %735 = vmatprep.subr.mxu1 %v878_v0 }
  0x1e   : > { %736 = vmatpush3.msra.mxu1 %v271_v5  ;;  %p819_p13 = pneg %p818_p12 }
  0x1f   : > { %737 = vmatprep.subr.mxu1 %v878_v0 }
  0x20   : > { %738 = vmatpush3.msra.mxu1 %v270_v6  ;;  %p826_p3 = pnand %p825_p2, %p819_p13 }
  0x21   : > { %739 = vmatprep.subr.mxu1 %v878_v0 }
  0x22   : > { %740 = vmatpush3.msra.mxu1 %v269_v7 }
  0x23   : > { %741 = vmatprep.subr.mxu1 %v878_v0 }
  0x24   : > { %742 = vmatpush3.msra.mxu1 %v268_v8 }
  0x25   : > { %743 = vmatprep.subr.mxu1 %v878_v0 }
  0x26   : > { %744 = vmatpush3.msra.mxu1 %v267_v9 }
  0x27   : > { %745 = vmatprep.subr.mxu1 %v878_v0 }
  0x28   : > { %746 = vmatpush3.msra.mxu1 %v266_v10 }
  0xd9   : > { %v354_v11 = vpop.f32.mrf.mxu1 }
  0xda   : > { %359 = vrot.lane.b32.xlu0 %v354_v11, %s880_s18 }
  0xdb   : > { %v730_v12 = vpop.f32.mrf.mxu1 }
 0x14c   : > { %v360_v13 = vpop.permute.xlu0 %359 }
 0x14d   : > { %v363_v14 = vsel %vm362_vm2, %v979_v1, %v360_v13 }
 0x14e   : > { %748 = vmatmul.mubr.msk.f32.vlgmr.msra.gmra.mxu1 %vm370_vm3, %v363_v14 }
 0x20e   : > { %v440_v16 = vpop.f32.mrf.mxu1 }
 0x20f   : > { %v441_v17 = vadd.f32 %v695_v15, %v440_v16 }
 0x210   : > { %v749_v18 = vpop.f32.mrf.mxu1 }
 0x211   : > { %v444_v19 = vmax.f32 %v441_v17, 0.0 }
 0x213   : > { %751 = vmatpush3.msra.mxu0 %v444_v19 }
 0x214   : > { %753 = vmatmul.mubr.msk.f32.vlgmr.msra.gmra.mxu0 %vm284_vm1, %v265_v2  ;;  %755 = vmatprep.subr.mxu0 %v878_v0 }
 0x215   : > { %771 = vmatprep.mubr.msk.f32.mxu0 %vm879_vm0, %v878_v0  ;;  %756 = vmatpush3.msra.mxu0 %v281_v20 }
 0x216   : > { %757 = vmatprep.subr.mxu0 %v878_v0 }
 0x217   : > { %758 = vmatpush3.msra.mxu0 %v280_v21 }
 0x218   : > { %759 = vmatprep.subr.mxu0 %v878_v0 }
 0x219   : > { %760 = vmatpush3.msra.mxu0 %v279_v22 }
 0x21a   : > { %761 = vmatprep.subr.mxu0 %v878_v0 }
 0x21b   : > { %762 = vmatpush3.msra.mxu0 %v278_v23 }
 0x21c   : > { %763 = vmatprep.subr.mxu0 %v878_v0 }
 0x21d   : > { %764 = vmatpush3.msra.mxu0 %v277_v24 }
 0x21e   : > { %765 = vmatprep.subr.mxu0 %v878_v0 }
 0x21f   : > { %766 = vmatpush3.msra.mxu0 %v276_v25 }
 0x220   : > { %767 = vmatprep.subr.mxu0 %v878_v0 }
 0x221   : > { %768 = vmatpush3.msra.mxu0 %v275_v26 }
 0x222   : > { %769 = vmatprep.subr.mxu0 %v878_v0 }
 0x223   : > { %770 = vmatpush3.msra.mxu0 %v274_v27 }
 0x2d4   : > { %v511_v28 = vpop.f32.mrf.mxu0 }
 0x2d5   : > { %516 = vrot.lane.b32.xlu0 %v511_v28, %s880_s18 }
 0x2d6   : > { %v754_v29 = vpop.f32.mrf.mxu0 }
 0x347   : > { %v517_v30 = vpop.permute.xlu0 %516 }
 0x348   : > { %v519_v31 = vsel %vm362_vm2, %v444_v19, %v517_v30 }
 0x349   : > { %772 = vmatmul.mubr.msk.f32.vlgmr.msra.gmra.mxu0 %vm370_vm3, %v519_v31 }
 0x409   : > { %v595_v33 = vpop.f32.mrf.mxu0 }
 0x40a   : > { %v596_v34 = vadd.f32 %v698_v32, %v595_v33 }
 0x40b   : > { %v773_v35 = vpop.f32.mrf.mxu0 }
 0x40c   : > { %v599_v36 = vadd.f32 %v596_v34, %v979_v1 }
 0x40e   : > { %v600_v37 = vmax.f32 %v599_v36, 0.0 }
 0x410   : > { %601 = vst.msk [vmem:[%s255_s13] sm:$0xff] %vm362_vm2, %v600_v37 }
 0x411   : > { %829 = shalt.err (!%p826_p3)
}
 0x412   : > { %s830_s28 = scalar_lea.hbm %s614_s16, 128  ;;  %s834_s10 = scalar_lea.hbm %s1107_s6, 256 }
 0x413   : > { %p831_p4 = scmp.ne.s32.totalorder %s614_s16, %s830_s28  ;;  %p835_p9 = scmp.lt.s32.totalorder %s614_s16, %s1107_s6 }
 0x414   : > { %p836_p10 = scmp.lt.s32.totalorder %s834_s10, %s830_s28 }
 0x415   : > { %p832_p7 = pnand %p831_p4, %p955_p5 }
 0x416   : > { %p837_p11 = por %p836_p10, %p835_p9 }
 0x417   : > { %p833_p8 = pneg %p832_p7 }
 0x419   : > { %p838_p12 = pnand %p837_p11, %p833_p8 }
 0x41b   : > { %841 = shalt.err (!%p838_p12)
}
 0x41c   : > { %774 = dma.vmem_to_hbm [thread:$0]  (%p955_p5), %s617_s14, 128, %s614_s16, %s603_s17  }
 0x41d PF: > { %p780_p13 = scmp.ge.s32.totalorder %s876_s24, 2  ;;  %s628_s13 = sand.u32 1, %s864_s21  }
 0x41e   : > { %s629_s18 = scalar_lea.sflag [#allocation3], %s628_s13 }
 0x41f   : > { %p777_p0 = pnand %p780_p13, %p959_p6 }
 0x421   : > { %p778_p1 = pneg %p777_p0 }
 0x423   : > { %859 = dma.done.wait (%p778_p1), %s629_s18, 128  }
 0x424   : > { %861 = vsyncadd (%p778_p1), %s629_s18, 4294967168  ;;  %p16_p2 = scmp.ge.s32.totalorder %s942_s27, 4   ;;  %s1110_s21 = smov %s868_s22 }
 0x425   : > { %s1111_s22 = smov %s872_s23  ;;  %s1112_s23 = smov %s953_s30 }
 0x426   : > { %s1113_s24 = smov %s942_s27  ;;  %18 = sbr.rel (!%p16_p2) target bundleno = 3 (0x3), region = 82 }
 0x42b   :  { %634 = vsyncpa [#allocation3], 1 }
 0x42c   :  { %636 = vsyncpa [#allocation3 + $0x1], 1 }

</bundles_post_ra>
